<compile_context>
chip_gen: v7x
topology: tpu7x:2x2x1
jax: 0.10.0
libtpu: 0.0.40
codegen_flags: <defaults>
</compile_context>

<pallas_src>
from functools import partial

import jax
import jax.numpy as jnp
import numpy as np
from jax.experimental import pallas as pl
from jax.experimental.pallas import tpu as pltpu

_VMEM_LIMIT_BYTES = 48 * 1024 * 1024  # safe on v7x (64 MiB physical); plenty on v5e/v6e


# ---------------------------------------------------------------------------
# Kernel 1: fused QKV projection.
#   qkv = x @ W_qkv + b_qkv,  W_qkv = [wq.T*scale | wk.T | wv.T]  (shape [E, 3E])
#   Outputs are written head-split, i.e. q/k/v have shape (B, H, S, D): the lane
#   relayout for the head split happens exactly once per token here, instead of
#   once per kv step inside the attention kernel.
# ---------------------------------------------------------------------------
def _qkv_proj_kernel(x_ref, w_ref, b_ref, q_ref, k_ref, v_ref, *,
                     embed_dim, num_heads, head_dim):
    x = x_ref[0].astype(w_ref.dtype)                                    # (tS, E)
    qkv = jnp.dot(x, w_ref[...], preferred_element_type=jnp.float32)    # (tS, 3E) f32
    qkv = (qkv + b_ref[...]).astype(q_ref.dtype)
    for p_idx, out_ref in enumerate((q_ref, k_ref, v_ref)):
        base = p_idx * embed_dim
        for h in range(num_heads):                                       # static unroll
            out_ref[0, h] = qkv[:, base + h * head_dim: base + (h + 1) * head_dim]


# ---------------------------------------------------------------------------
# Kernel 2: per-head flash attention (online softmax over kv tiles) with the
# out-projection folded into the finalize (per-head Wo slice, accumulated across
# the head grid axis into an f32 scratch).
#   grid = (batch, q_tiles, heads, kv_tiles); output block index = (b, qi) only.
# ---------------------------------------------------------------------------
def _flash_attn_out_kernel(q_ref, k_ref, v_ref, wo_ref, bo_ref, o_ref,
                           m_sc, l_sc, acc_sc, oacc_sc, *, num_heads, approx_recip):
    h = pl.program_id(2)
    ki = pl.program_id(3)

    @pl.when(ki == 0)
    def _init():
        m_sc[...] = jnp.full(m_sc.shape, -jnp.inf, dtype=m_sc.dtype)
        l_sc[...] = jnp.zeros(l_sc.shape, dtype=l_sc.dtype)
        acc_sc[...] = jnp.zeros(acc_sc.shape, dtype=acc_sc.dtype)

    q = q_ref[0, 0]                                                      # (tQ, D)
    k = k_ref[0, 0]                                                      # (tK, D)
    v = v_ref[0, 0]                                                      # (tK, D)

    # q @ k^T via dot_general contracting last dims (no materialized transpose).
    s = jax.lax.dot_general(q, k, (((1,), (1,)), ((), ())),
                            preferred_element_type=jnp.float32)          # (tQ, tK) f32

    m_prev = m_sc[...]
    m_new = jnp.maximum(m_prev, s.max(axis=-1, keepdims=True))
    alpha = jnp.exp(m_prev - m_new)
    p = jnp.exp(s - m_new)                                               # f32 (v5e-safe)
    l_sc[...] = alpha * l_sc[...] + p.sum(axis=-1, keepdims=True)
    acc_sc[...] = alpha * acc_sc[...] + jnp.dot(
        p.astype(v.dtype), v, preferred_element_type=jnp.float32)
    m_sc[...] = m_new

    @pl.when(ki == pl.num_programs(3) - 1)
    def _finalize():
        # EUP reciprocal frees the VALU; ~1e-3 relative error (documented; flag below).
        inv_l = pl.reciprocal(l_sc[...], approx=approx_recip)
        attn = acc_sc[...] * inv_l                                       # (tQ, D) f32
        # Per-head out-projection slice: (tQ, D) @ (D, E) -> (tQ, E), f32 accumulate.
        contrib = jnp.dot(attn.astype(wo_ref.dtype), wo_ref[...],
                          preferred_element_type=jnp.float32)

        @pl.when(h == 0)
        def _():
            oacc_sc[...] = contrib

        @pl.when(h > 0)
        def _():
            oacc_sc[...] = oacc_sc[...] + contrib

        @pl.when(h == num_heads - 1)
        def _():
            o_ref[0] = (oacc_sc[...] + bo_ref[...]).astype(o_ref.dtype)


# ---------------------------------------------------------------------------
# Wrapper mimicking bart_forward (self-attention, no mask, eval mode).
# ---------------------------------------------------------------------------
def m2m100_attention_forward(hidden_states, params, num_heads, *,
                             q_block=256, kv_block=256, proj_block=256,
                             compute_dtype=jnp.bfloat16, approx_recip=True,
                             interpret=False):
    B, S, E = hidden_states.shape
    assert E % num_heads == 0
    head_dim = E // num_heads
    dtype = hidden_states.dtype
    cdt = jnp.dtype(compute_dtype) if compute_dtype is not None else jnp.dtype(dtype)

    wq, bq, wk, bk, wv, bv, wo, bo = params
    scale = 1.0 / (head_dim ** 0.5)

    # One-time weight prep (done under jit here; pre-pack once in production):
    # transpose to [in, out], fuse QKV, fold the softmax scale into the q projection.
    w_qkv = jnp.concatenate([wq.T * scale, wk.T, wv.T], axis=1).astype(cdt)     # (E, 3E)
    b_qkv = jnp.concatenate([bq * scale, bk, bv], axis=0).reshape(1, 3 * E).astype(jnp.float32)
    wo_t = wo.T.astype(cdt)                                                     # (E, E) [in, out]
    bo_r = bo.reshape(1, E).astype(jnp.float32)

    tS = min(proj_block, S)
    tQ = min(q_block, S)
    tK = min(kv_block, S)
    # TODO(synk): production shapes need cdiv grids + masked tails instead of these asserts.
    assert S % tS == 0 and S % tQ == 0 and S % tK == 0, "seq len must divide block sizes"

    # ---- fused QKV projection: grid over (batch, seq tiles), both parallel ----
    # q/k/v are stored in compute dtype (bf16 by default) -> half the HBM round trip.
    q, k, v = pl.pallas_call(
        partial(_qkv_proj_kernel, embed_dim=E, num_heads=num_heads, head_dim=head_dim),
        out_shape=(jax.ShapeDtypeStruct((B, num_heads, S, head_dim), cdt),) * 3,
        grid=(B, S // tS),
        in_specs=[
            pl.BlockSpec((1, tS, E), lambda b, s: (b, s, 0)),
            pl.BlockSpec((E, 3 * E), lambda b, s: (0, 0)),   # constant index -> fetched once
            pl.BlockSpec((1, 3 * E), lambda b, s: (0, 0)),
        ],
        out_specs=(pl.BlockSpec((1, num_heads, tS, head_dim),
                                lambda b, s: (b, 0, s, 0)),) * 3,
        compiler_params=pltpu.CompilerParams(
            dimension_semantics=("parallel", "parallel"),
            vmem_limit_bytes=_VMEM_LIMIT_BYTES),
        interpret=interpret,
    )(hidden_states, w_qkv, b_qkv)

    # ---- flash attention + per-head out projection ----
    # grid (B, q tiles, heads, kv tiles); output tile (b, qi) resident across (h, ki).
    attn_out = pl.pallas_call(
        partial(_flash_attn_out_kernel, num_heads=num_heads, approx_recip=approx_recip),
        out_shape=jax.ShapeDtypeStruct((B, S, E), dtype),
        grid=(B, S // tQ, num_heads, S // tK),
        in_specs=[
            pl.BlockSpec((1, 1, tQ, head_dim), lambda b, qi, h, ki: (b, h, qi, 0)),
            pl.BlockSpec((1, 1, tK, head_dim), lambda b, qi, h, ki: (b, h, ki, 0)),
            pl.BlockSpec((1, 1, tK, head_dim), lambda b, qi, h, ki: (b, h, ki, 0)),
            pl.BlockSpec((head_dim, E), lambda b, qi, h, ki: (h, 0)),   # per-head Wo slice
            pl.BlockSpec((1, E), lambda b, qi, h, ki: (0, 0)),
        ],
        out_specs=pl.BlockSpec((1, tQ, E), lambda b, qi, h, ki: (b, qi, 0)),
        scratch_shapes=[
            pltpu.VMEM((tQ, 1), jnp.float32),          # running max m
            pltpu.VMEM((tQ, 1), jnp.float32),          # running denom l
            pltpu.VMEM((tQ, head_dim), jnp.float32),   # per-head output accumulator
            pltpu.VMEM((tQ, E), jnp.float32),          # out-projection accumulator (over heads)
        ],
        compiler_params=pltpu.CompilerParams(
            dimension_semantics=("parallel", "parallel", "arbitrary", "arbitrary"),
            vmem_limit_bytes=_VMEM_LIMIT_BYTES),
        interpret=interpret,
    )(q, k, v, wo_t, bo_r)

    # present key/value states already in M2M100Attention layout (B, H, S, head_dim),
    # stored in compute dtype (bf16 by default; pass compute_dtype=None for exact cache).
    present = (k, v)
    # TODO(synk): cross-attention (key_value_states), past_key_value concat, additive
    # attention_mask / layer_head_mask and output_attentions branches of bart_forward are
    # not implemented (glue-level branching; the same kernels would apply).
    return attn_out, None, present


# ---------------------------------------------------------------------------
# Pure-JAX reference (mirrors BartAttention/M2M100Attention eager math).
# ---------------------------------------------------------------------------
def _reference_forward(x, params, num_heads):
    B, S, E = x.shape
    D = E // num_heads
    wq, bq, wk, bk, wv, bv, wo, bo = params
    q = x @ wq.T + bq
    k = x @ wk.T + bk
    v = x @ wv.T + bv
    qh = q.reshape(B, S, num_heads, D).transpose(0, 2, 1, 3)
    kh = k.reshape(B, S, num_heads, D).transpose(0, 2, 1, 3)
    vh = v.reshape(B, S, num_heads, D).transpose(0, 2, 1, 3)
    s = jnp.einsum("bhqd,bhkd->bhqk", qh, kh) / jnp.sqrt(jnp.float32(D))
    p = jax.nn.softmax(s, axis=-1)
    a = jnp.einsum("bhqk,bhkd->bhqd", p, vh)
    a = a.transpose(0, 2, 1, 3).reshape(B, S, E)
    return a @ wo.T + bo, kh, vh


if __name__ == "__main__":
    B, S, E, H = 2, 8, 32, 4  # batch, seq, embed_dim, num_heads

    key = jax.random.PRNGKey(0)
    keys = jax.random.split(key, 9)
    init = lambda k, shape: (0.02 * jax.random.normal(k, shape)).astype(jnp.float32)
    params = (
        init(keys[0], (E, E)), init(keys[1], (E,)),   # q_proj (weight, bias)
        init(keys[2], (E, E)), init(keys[3], (E,)),   # k_proj
        init(keys[4], (E, E)), init(keys[5], (E,)),   # v_proj
        init(keys[6], (E, E)), init(keys[7], (E,)),   # out_proj
    )
    hidden_states = jax.random.normal(keys[8], (B, S, E), dtype=jnp.float32)

    fwd = jax.jit(partial(m2m100_attention_forward, num_heads=H))
    attn_out, _, present = fwd(hidden_states, params)
    attn_out = jax.block_until_ready(attn_out)
    present = jax.block_until_ready(present)

    ref_out, ref_k, ref_v = _reference_forward(hidden_states, params, H)
    # Tolerances account for the bf16 compute path (weights + q/k/v storage), the
    # approximate EUP reciprocal in the softmax denominator, and online-softmax
    # reassociation.
    assert np.allclose(np.asarray(attn_out, dtype=np.float32), np.asarray(ref_out),
                       atol=2e-3, rtol=2e-2)
    assert present[0].shape == (B, H, S, E // H)
    assert np.allclose(np.asarray(present[0], dtype=np.float32), np.asarray(ref_k),
                       atol=5e-3, rtol=5e-2)
    assert np.allclose(np.asarray(present[1], dtype=np.float32), np.asarray(ref_v),
                       atol=5e-3, rtol=5e-2)

    print("KERNEL_OK")
</pallas_src>

<mosaic_0001>
module attributes {stable_mosaic.version = 11 : i64} {
  func.func @_flash_attn_out_kernel(%arg0: i32, %arg1: i32, %arg2: i32, %arg3: i32, %arg4: memref<1x1x8x8xbf16, #tpu.memory_space<vmem>>, %arg5: memref<1x1x8x8xbf16, #tpu.memory_space<vmem>>, %arg6: memref<1x1x8x8xbf16, #tpu.memory_space<vmem>>, %arg7: memref<8x32xbf16, #tpu.memory_space<vmem>>, %arg8: memref<1x32xf32, #tpu.memory_space<vmem>>, %arg9: memref<1x8x32xf32, #tpu.memory_space<vmem>>, %arg10: memref<8x1xf32, #tpu.memory_space<vmem>>, %arg11: memref<8x1xf32, #tpu.memory_space<vmem>>, %arg12: memref<8x8xf32, #tpu.memory_space<vmem>>, %arg13: memref<8x32xf32, #tpu.memory_space<vmem>>) attributes {dimension_semantics = [#tpu.dimension_semantics<parallel>, #tpu.dimension_semantics<parallel>, #tpu.dimension_semantics<arbitrary>, #tpu.dimension_semantics<arbitrary>], iteration_bounds = array<i64: 2, 1, 4, 1>, scalar_prefetch = 0 : i64, scratch_operands = 4 : i64, tpu.core_type = #tpu.core_type<tc>, window_params = [{transform_indices = @transform_0, window_bounds = array<i64: 1, 1, 8, 8>}, {transform_indices = @transform_1, window_bounds = array<i64: 1, 1, 8, 8>}, {transform_indices = @transform_2, window_bounds = array<i64: 1, 1, 8, 8>}, {transform_indices = @transform_3, window_bounds = array<i64: 8, 32>}, {pipeline_mode = #tpu.pipeline_mode<synchronous>, transform_indices = @transform_4, window_bounds = array<i64: 1, 32>}, {transform_indices = @transform_5, window_bounds = array<i64: 1, 8, 32>}]} {
    %c0_i32 = arith.constant 0 : i32
    %0 = arith.cmpi eq, %arg3, %c0_i32 : i32
    %1 = arith.extui %0 : i1 to i32
    %c0_i32_0 = arith.constant 0 : i32
    %2 = arith.cmpi ne, %1, %c0_i32_0 : i32
    scf.if %2 {
      %cst_29 = arith.constant 0xFF800000 : f32
      %36 = vector.broadcast %cst_29 : f32 to vector<8x1xf32>
      %c0_30 = arith.constant 0 : index
      %c0_31 = arith.constant 0 : index
      %37 = vector.load %arg10[%c0_30, %c0_31] : memref<8x1xf32, #tpu.memory_space<vmem>>, vector<8x1xf32>
      tpu.vector_store %arg10[%c0_30, %c0_31], %36 {strides = array<i32>} : memref<8x1xf32, #tpu.memory_space<vmem>>, vector<8x1xf32>,
      %cst_32 = arith.constant 0.000000e+00 : f32
      %38 = vector.broadcast %cst_32 : f32 to vector<8x1xf32>
      %c0_33 = arith.constant 0 : index
      %c0_34 = arith.constant 0 : index
      %39 = vector.load %arg11[%c0_33, %c0_34] : memref<8x1xf32, #tpu.memory_space<vmem>>, vector<8x1xf32>
      tpu.vector_store %arg11[%c0_33, %c0_34], %38 {strides = array<i32>} : memref<8x1xf32, #tpu.memory_space<vmem>>, vector<8x1xf32>,
      %cst_35 = arith.constant 0.000000e+00 : f32
      %40 = vector.broadcast %cst_35 : f32 to vector<8x8xf32>
      %c0_36 = arith.constant 0 : index
      %c0_37 = arith.constant 0 : index
      %41 = vector.load %arg12[%c0_36, %c0_37] : memref<8x8xf32, #tpu.memory_space<vmem>>, vector<8x8xf32>
      tpu.vector_store %arg12[%c0_36, %c0_37], %40 {strides = array<i32>} : memref<8x8xf32, #tpu.memory_space<vmem>>, vector<8x8xf32>,
    } else {
    }
    %c0 = arith.constant 0 : index
    %c0_1 = arith.constant 0 : index
    %c0_2 = arith.constant 0 : index
    %c0_3 = arith.constant 0 : index
    %3 = vector.load %arg4[%c0, %c0_1, %c0_2, %c0_3] : memref<1x1x8x8xbf16, #tpu.memory_space<vmem>>, vector<1x1x8x8xbf16>
    %4 = vector.shape_cast %3 : vector<1x1x8x8xbf16> to vector<8x8xbf16>
    %c0_4 = arith.constant 0 : index
    %c0_5 = arith.constant 0 : index
    %c0_6 = arith.constant 0 : index
    %c0_7 = arith.constant 0 : index
    %5 = vector.load %arg5[%c0_4, %c0_5, %c0_6, %c0_7] : memref<1x1x8x8xbf16, #tpu.memory_space<vmem>>, vector<1x1x8x8xbf16>
    %6 = vector.shape_cast %5 : vector<1x1x8x8xbf16> to vector<8x8xbf16>
    %c0_8 = arith.constant 0 : index
    %c0_9 = arith.constant 0 : index
    %c0_10 = arith.constant 0 : index
    %c0_11 = arith.constant 0 : index
    %7 = vector.load %arg6[%c0_8, %c0_9, %c0_10, %c0_11] : memref<1x1x8x8xbf16, #tpu.memory_space<vmem>>, vector<1x1x8x8xbf16>
    %8 = vector.shape_cast %7 : vector<1x1x8x8xbf16> to vector<8x8xbf16>
    %cst = arith.constant dense<0.000000e+00> : vector<8x8xf32>
    %9 = tpu.matmul %4, %6, %cst {dimension_numbers = #tpu.dot_dimension_numbers<[1], [1], [0], [0], [0, 0, 1, 0], [], []>} : vector<8x8xbf16>, vector<8x8xbf16>, vector<8x8xf32> -> vector<8x8xf32>
    %c0_12 = arith.constant 0 : index
    %c0_13 = arith.constant 0 : index
    %10 = vector.load %arg10[%c0_12, %c0_13] : memref<8x1xf32, #tpu.memory_space<vmem>>, vector<8x1xf32>
    %cst_14 = arith.constant dense<0xFF800000> : vector<8xf32>
    %11 = vector.multi_reduction <maximumf>, %9, %cst_14 [1] : vector<8x8xf32> to vector<8xf32>
    %12 = vector.shape_cast %11 : vector<8xf32> to vector<8x1xf32>
    %13 = arith.maximumf %10, %12 : vector<8x1xf32>
    %14 = arith.subf %10, %13 : vector<8x1xf32>
    %15 = math.exp %14 : vector<8x1xf32>
    %16 = vector.broadcast %13 : vector<8x1xf32> to vector<8x8xf32>
    %17 = arith.subf %9, %16 : vector<8x8xf32>
    %18 = math.exp %17 : vector<8x8xf32>
    %c0_15 = arith.constant 0 : index
    %c0_16 = arith.constant 0 : index
    %19 = vector.load %arg11[%c0_15, %c0_16] : memref<8x1xf32, #tpu.memory_space<vmem>>, vector<8x1xf32>
    %20 = arith.mulf %15, %19 : vector<8x1xf32>
    %cst_17 = arith.constant dense<0.000000e+00> : vector<8xf32>
    %21 = vector.multi_reduction <add>, %18, %cst_17 [1] : vector<8x8xf32> to vector<8xf32>
    %22 = vector.shape_cast %21 : vector<8xf32> to vector<8x1xf32>
    %23 = arith.addf %20, %22 : vector<8x1xf32>
    %c0_18 = arith.constant 0 : index
    %c0_19 = arith.constant 0 : index
    %24 = vector.load %arg11[%c0_18, %c0_19] : memref<8x1xf32, #tpu.memory_space<vmem>>, vector<8x1xf32>
    tpu.vector_store %arg11[%c0_18, %c0_19], %23 {strides = array<i32>} : memref<8x1xf32, #tpu.memory_space<vmem>>, vector<8x1xf32>,
    %c0_20 = arith.constant 0 : index
    %c0_21 = arith.constant 0 : index
    %25 = vector.load %arg12[%c0_20, %c0_21] : memref<8x8xf32, #tpu.memory_space<vmem>>, vector<8x8xf32>
    %26 = vector.broadcast %15 : vector<8x1xf32> to vector<8x8xf32>
    %27 = arith.mulf %26, %25 : vector<8x8xf32>
    %28 = arith.truncf %18 : vector<8x8xf32> to vector<8x8xbf16>
    %cst_22 = arith.constant dense<0.000000e+00> : vector<8x8xf32>
    %29 = tpu.matmul %28, %8, %cst_22 {dimension_numbers = #tpu.dot_dimension_numbers<[1], [0], [0], [1], [0, 0, 1, 1], [], []>} : vector<8x8xbf16>, vector<8x8xbf16>, vector<8x8xf32> -> vector<8x8xf32>
    %30 = arith.addf %27, %29 : vector<8x8xf32>
    %c0_23 = arith.constant 0 : index
    %c0_24 = arith.constant 0 : index
    %31 = vector.load %arg12[%c0_23, %c0_24] : memref<8x8xf32, #tpu.memory_space<vmem>>, vector<8x8xf32>
    tpu.vector_store %arg12[%c0_23, %c0_24], %30 {strides = array<i32>} : memref<8x8xf32, #tpu.memory_space<vmem>>, vector<8x8xf32>,
    %c0_25 = arith.constant 0 : index
    %c0_26 = arith.constant 0 : index
    %32 = vector.load %arg10[%c0_25, %c0_26] : memref<8x1xf32, #tpu.memory_space<vmem>>, vector<8x1xf32>
    tpu.vector_store %arg10[%c0_25, %c0_26], %13 {strides = array<i32>} : memref<8x1xf32, #tpu.memory_space<vmem>>, vector<8x1xf32>,
    %c0_i32_27 = arith.constant 0 : i32
    %33 = arith.cmpi eq, %arg3, %c0_i32_27 : i32
    %34 = arith.extui %33 : i1 to i32
    %c0_i32_28 = arith.constant 0 : i32
    %35 = arith.cmpi ne, %34, %c0_i32_28 : i32
    scf.if %35 {
      %c0_29 = arith.constant 0 : index
      %c0_30 = arith.constant 0 : index
      %36 = vector.load %arg11[%c0_29, %c0_30] : memref<8x1xf32, #tpu.memory_space<vmem>>, vector<8x1xf32>
      %37 = tpu.reciprocal %36 {approx = true} : vector<8x1xf32> -> vector<8x1xf32>
      %c0_31 = arith.constant 0 : index
      %c0_32 = arith.constant 0 : index
      %38 = vector.load %arg12[%c0_31, %c0_32] : memref<8x8xf32, #tpu.memory_space<vmem>>, vector<8x8xf32>
      %39 = vector.broadcast %37 : vector<8x1xf32> to vector<8x8xf32>
      %40 = arith.mulf %38, %39 : vector<8x8xf32>
      %41 = arith.truncf %40 : vector<8x8xf32> to vector<8x8xbf16>
      %c0_33 = arith.constant 0 : index
      %c0_34 = arith.constant 0 : index
      %42 = vector.load %arg7[%c0_33, %c0_34] : memref<8x32xbf16, #tpu.memory_space<vmem>>, vector<8x32xbf16>
      %cst_35 = arith.constant dense<0.000000e+00> : vector<8x32xf32>
      %43 = tpu.matmul %41, %42, %cst_35 {dimension_numbers = #tpu.dot_dimension_numbers<[1], [0], [0], [1], [0, 0, 1, 1], [], []>} : vector<8x8xbf16>, vector<8x32xbf16>, vector<8x32xf32> -> vector<8x32xf32>
      %c0_i32_36 = arith.constant 0 : i32
      %44 = arith.cmpi eq, %arg2, %c0_i32_36 : i32
      %45 = arith.extui %44 : i1 to i32
      %c0_i32_37 = arith.constant 0 : i32
      %46 = arith.cmpi ne, %45, %c0_i32_37 : i32
      scf.if %46 {
        %c0_41 = arith.constant 0 : index
        %c0_42 = arith.constant 0 : index
        %53 = vector.load %arg13[%c0_41, %c0_42] : memref<8x32xf32, #tpu.memory_space<vmem>>, vector<8x32xf32>
        tpu.vector_store %arg13[%c0_41, %c0_42], %43 {strides = array<i32>} : memref<8x32xf32, #tpu.memory_space<vmem>>, vector<8x32xf32>,
      } else {
      }
      %c0_i32_38 = arith.constant 0 : i32
      %47 = arith.cmpi sgt, %arg2, %c0_i32_38 : i32
      %48 = arith.extui %47 : i1 to i32
      %c0_i32_39 = arith.constant 0 : i32
      %49 = arith.cmpi ne, %48, %c0_i32_39 : i32
      scf.if %49 {
        %c0_41 = arith.constant 0 : index
        %c0_42 = arith.constant 0 : index
        %53 = vector.load %arg13[%c0_41, %c0_42] : memref<8x32xf32, #tpu.memory_space<vmem>>, vector<8x32xf32>
        %54 = arith.addf %53, %43 : vector<8x32xf32>
        %c0_43 = arith.constant 0 : index
        %c0_44 = arith.constant 0 : index
        %55 = vector.load %arg13[%c0_43, %c0_44] : memref<8x32xf32, #tpu.memory_space<vmem>>, vector<8x32xf32>
        tpu.vector_store %arg13[%c0_43, %c0_44], %54 {strides = array<i32>} : memref<8x32xf32, #tpu.memory_space<vmem>>, vector<8x32xf32>,
      } else {
      }
      %c3_i32 = arith.constant 3 : i32
      %50 = arith.cmpi eq, %arg2, %c3_i32 : i32
      %51 = arith.extui %50 : i1 to i32
      %c0_i32_40 = arith.constant 0 : i32
      %52 = arith.cmpi ne, %51, %c0_i32_40 : i32
      scf.if %52 {
        %c0_41 = arith.constant 0 : index
        %c0_42 = arith.constant 0 : index
        %53 = vector.load %arg13[%c0_41, %c0_42] : memref<8x32xf32, #tpu.memory_space<vmem>>, vector<8x32xf32>
        %c0_43 = arith.constant 0 : index
        %c0_44 = arith.constant 0 : index
        %54 = vector.load %arg8[%c0_43, %c0_44] : memref<1x32xf32, #tpu.memory_space<vmem>>, vector<1x32xf32>
        %55 = vector.broadcast %54 : vector<1x32xf32> to vector<8x32xf32>
        %56 = arith.addf %53, %55 : vector<8x32xf32>
        %c0_45 = arith.constant 0 : index
        %c0_46 = arith.constant 0 : index
        %c0_47 = arith.constant 0 : index
        %57 = vector.load %arg9[%c0_45, %c0_46, %c0_47] : memref<1x8x32xf32, #tpu.memory_space<vmem>>, vector<1x8x32xf32>
        %58 = vector.shape_cast %57 : vector<1x8x32xf32> to vector<8x32xf32>
        %59 = vector.shape_cast %56 : vector<8x32xf32> to vector<1x8x32xf32>
        tpu.vector_store %arg9[%c0_45, %c0_46, %c0_47], %59 {strides = array<i32>} : memref<1x8x32xf32, #tpu.memory_space<vmem>>, vector<1x8x32xf32>,
      } else {
      }
    } else {
    }
    return
  }
  func.func @transform_0(%arg0: i32, %arg1: i32, %arg2: i32, %arg3: i32) -> (i32, i32, i32, i32) {
    %c0_i32 = arith.constant 0 : i32
    %c0_i32_0 = arith.constant 0 : i32
    return %arg0, %arg2, %arg1, %c0_i32 : i32, i32, i32, i32
  }
  func.func @transform_1(%arg0: i32, %arg1: i32, %arg2: i32, %arg3: i32) -> (i32, i32, i32, i32) {
    %c0_i32 = arith.constant 0 : i32
    %c0_i32_0 = arith.constant 0 : i32
    return %arg0, %arg2, %arg3, %c0_i32 : i32, i32, i32, i32
  }
  func.func @transform_2(%arg0: i32, %arg1: i32, %arg2: i32, %arg3: i32) -> (i32, i32, i32, i32) {
    %c0_i32 = arith.constant 0 : i32
    %c0_i32_0 = arith.constant 0 : i32
    return %arg0, %arg2, %arg3, %c0_i32 : i32, i32, i32, i32
  }
  func.func @transform_3(%arg0: i32, %arg1: i32, %arg2: i32, %arg3: i32) -> (i32, i32) {
    %c0_i32 = arith.constant 0 : i32
    %c0_i32_0 = arith.constant 0 : i32
    return %arg2, %c0_i32 : i32, i32
  }
  func.func @transform_4(%arg0: i32, %arg1: i32, %arg2: i32, %arg3: i32) -> (i32, i32) {
    %c0_i32 = arith.constant 0 : i32
    %c0_i32_0 = arith.constant 0 : i32
    %c0_i32_1 = arith.constant 0 : i32
    return %c0_i32, %c0_i32_0 : i32, i32
  }
  func.func @transform_5(%arg0: i32, %arg1: i32, %arg2: i32, %arg3: i32) -> (i32, i32, i32) {
    %c0_i32 = arith.constant 0 : i32
    %c0_i32_0 = arith.constant 0 : i32
    return %arg0, %arg1, %c0_i32 : i32, i32, i32
  }
}

module attributes {stable_mosaic.version = 11 : i64} {
  func.func @_qkv_proj_kernel(%arg0: i32, %arg1: i32, %arg2: memref<1x8x32xf32, #tpu.memory_space<vmem>>, %arg3: memref<32x96xbf16, #tpu.memory_space<vmem>>, %arg4: memref<1x96xf32, #tpu.memory_space<vmem>>, %arg5: memref<1x4x8x8xbf16, #tpu.memory_space<vmem>>, %arg6: memref<1x4x8x8xbf16, #tpu.memory_space<vmem>>, %arg7: memref<1x4x8x8xbf16, #tpu.memory_space<vmem>>) attributes {dimension_semantics = [#tpu.dimension_semantics<parallel>, #tpu.dimension_semantics<parallel>], iteration_bounds = array<i64: 2, 1>, scalar_prefetch = 0 : i64, scratch_operands = 0 : i64, tpu.core_type = #tpu.core_type<tc>, window_params = [{transform_indices = @transform_0, window_bounds = array<i64: 1, 8, 32>}, {pipeline_mode = #tpu.pipeline_mode<synchronous>, transform_indices = @transform_1, window_bounds = array<i64: 32, 96>}, {pipeline_mode = #tpu.pipeline_mode<synchronous>, transform_indices = @transform_2, window_bounds = array<i64: 1, 96>}, {transform_indices = @transform_3, window_bounds = array<i64: 1, 4, 8, 8>}, {transform_indices = @transform_4, window_bounds = array<i64: 1, 4, 8, 8>}, {transform_indices = @transform_5, window_bounds = array<i64: 1, 4, 8, 8>}]} {
    %c0 = arith.constant 0 : index
    %c0_0 = arith.constant 0 : index
    %c0_1 = arith.constant 0 : index
    %0 = vector.load %arg2[%c0, %c0_0, %c0_1] : memref<1x8x32xf32, #tpu.memory_space<vmem>>, vector<1x8x32xf32>
    %1 = vector.shape_cast %0 : vector<1x8x32xf32> to vector<8x32xf32>
    %2 = arith.truncf %1 : vector<8x32xf32> to vector<8x32xbf16>
    %c0_2 = arith.constant 0 : index
    %c0_3 = arith.constant 0 : index
    %3 = vector.load %arg3[%c0_2, %c0_3] : memref<32x96xbf16, #tpu.memory_space<vmem>>, vector<32x96xbf16>
    %cst = arith.constant dense<0.000000e+00> : vector<8x96xf32>
    %4 = tpu.matmul %2, %3, %cst {dimension_numbers = #tpu.dot_dimension_numbers<[1], [0], [0], [1], [0, 0, 1, 1], [], []>} : vector<8x32xbf16>, vector<32x96xbf16>, vector<8x96xf32> -> vector<8x96xf32>
    %c0_4 = arith.constant 0 : index
    %c0_5 = arith.constant 0 : index
    %5 = vector.load %arg4[%c0_4, %c0_5] : memref<1x96xf32, #tpu.memory_space<vmem>>, vector<1x96xf32>
    %6 = vector.broadcast %5 : vector<1x96xf32> to vector<8x96xf32>
    %7 = arith.addf %4, %6 : vector<8x96xf32>
    %8 = arith.truncf %7 : vector<8x96xf32> to vector<8x96xbf16>
    %9 = vector.extract_strided_slice %8 {offsets = [0, 0], sizes = [8, 8], strides = [1, 1]} : vector<8x96xbf16> to vector<8x8xbf16>
    %c0_6 = arith.constant 0 : index
    %c0_7 = arith.constant 0 : index
    %c0_8 = arith.constant 0 : index
    %c0_9 = arith.constant 0 : index
    %10 = vector.load %arg5[%c0_6, %c0_7, %c0_8, %c0_9] : memref<1x4x8x8xbf16, #tpu.memory_space<vmem>>, vector<1x1x8x8xbf16>
    %11 = vector.shape_cast %10 : vector<1x1x8x8xbf16> to vector<8x8xbf16>
    %12 = vector.shape_cast %9 : vector<8x8xbf16> to vector<1x1x8x8xbf16>
    tpu.vector_store %arg5[%c0_6, %c0_7, %c0_8, %c0_9], %12 {strides = array<i32>} : memref<1x4x8x8xbf16, #tpu.memory_space<vmem>>, vector<1x1x8x8xbf16>,
    %13 = vector.extract_strided_slice %8 {offsets = [0, 8], sizes = [8, 8], strides = [1, 1]} : vector<8x96xbf16> to vector<8x8xbf16>
    %c0_10 = arith.constant 0 : index
    %c1 = arith.constant 1 : index
    %c0_11 = arith.constant 0 : index
    %c0_12 = arith.constant 0 : index
    %14 = vector.load %arg5[%c0_10, %c1, %c0_11, %c0_12] : memref<1x4x8x8xbf16, #tpu.memory_space<vmem>>, vector<1x1x8x8xbf16>
    %15 = vector.shape_cast %14 : vector<1x1x8x8xbf16> to vector<8x8xbf16>
    %16 = vector.shape_cast %13 : vector<8x8xbf16> to vector<1x1x8x8xbf16>
    tpu.vector_store %arg5[%c0_10, %c1, %c0_11, %c0_12], %16 {strides = array<i32>} : memref<1x4x8x8xbf16, #tpu.memory_space<vmem>>, vector<1x1x8x8xbf16>,
    %17 = vector.extract_strided_slice %8 {offsets = [0, 16], sizes = [8, 8], strides = [1, 1]} : vector<8x96xbf16> to vector<8x8xbf16>
    %c0_13 = arith.constant 0 : index
    %c2 = arith.constant 2 : index
    %c0_14 = arith.constant 0 : index
    %c0_15 = arith.constant 0 : index
    %18 = vector.load %arg5[%c0_13, %c2, %c0_14, %c0_15] : memref<1x4x8x8xbf16, #tpu.memory_space<vmem>>, vector<1x1x8x8xbf16>
    %19 = vector.shape_cast %18 : vector<1x1x8x8xbf16> to vector<8x8xbf16>
    %20 = vector.shape_cast %17 : vector<8x8xbf16> to vector<1x1x8x8xbf16>
    tpu.vector_store %arg5[%c0_13, %c2, %c0_14, %c0_15], %20 {strides = array<i32>} : memref<1x4x8x8xbf16, #tpu.memory_space<vmem>>, vector<1x1x8x8xbf16>,
    %21 = vector.extract_strided_slice %8 {offsets = [0, 24], sizes = [8, 8], strides = [1, 1]} : vector<8x96xbf16> to vector<8x8xbf16>
    %c0_16 = arith.constant 0 : index
    %c3 = arith.constant 3 : index
    %c0_17 = arith.constant 0 : index
    %c0_18 = arith.constant 0 : index
    %22 = vector.load %arg5[%c0_16, %c3, %c0_17, %c0_18] : memref<1x4x8x8xbf16, #tpu.memory_space<vmem>>, vector<1x1x8x8xbf16>
    %23 = vector.shape_cast %22 : vector<1x1x8x8xbf16> to vector<8x8xbf16>
    %24 = vector.shape_cast %21 : vector<8x8xbf16> to vector<1x1x8x8xbf16>
    tpu.vector_store %arg5[%c0_16, %c3, %c0_17, %c0_18], %24 {strides = array<i32>} : memref<1x4x8x8xbf16, #tpu.memory_space<vmem>>, vector<1x1x8x8xbf16>,
    %25 = vector.extract_strided_slice %8 {offsets = [0, 32], sizes = [8, 8], strides = [1, 1]} : vector<8x96xbf16> to vector<8x8xbf16>
    %c0_19 = arith.constant 0 : index
    %c0_20 = arith.constant 0 : index
    %c0_21 = arith.constant 0 : index
    %c0_22 = arith.constant 0 : index
    %26 = vector.load %arg6[%c0_19, %c0_20, %c0_21, %c0_22] : memref<1x4x8x8xbf16, #tpu.memory_space<vmem>>, vector<1x1x8x8xbf16>
    %27 = vector.shape_cast %26 : vector<1x1x8x8xbf16> to vector<8x8xbf16>
    %28 = vector.shape_cast %25 : vector<8x8xbf16> to vector<1x1x8x8xbf16>
    tpu.vector_store %arg6[%c0_19, %c0_20, %c0_21, %c0_22], %28 {strides = array<i32>} : memref<1x4x8x8xbf16, #tpu.memory_space<vmem>>, vector<1x1x8x8xbf16>,
    %29 = vector.extract_strided_slice %8 {offsets = [0, 40], sizes = [8, 8], strides = [1, 1]} : vector<8x96xbf16> to vector<8x8xbf16>
    %c0_23 = arith.constant 0 : index
    %c1_24 = arith.constant 1 : index
    %c0_25 = arith.constant 0 : index
    %c0_26 = arith.constant 0 : index
    %30 = vector.load %arg6[%c0_23, %c1_24, %c0_25, %c0_26] : memref<1x4x8x8xbf16, #tpu.memory_space<vmem>>, vector<1x1x8x8xbf16>
    %31 = vector.shape_cast %30 : vector<1x1x8x8xbf16> to vector<8x8xbf16>
    %32 = vector.shape_cast %29 : vector<8x8xbf16> to vector<1x1x8x8xbf16>
    tpu.vector_store %arg6[%c0_23, %c1_24, %c0_25, %c0_26], %32 {strides = array<i32>} : memref<1x4x8x8xbf16, #tpu.memory_space<vmem>>, vector<1x1x8x8xbf16>,
    %33 = vector.extract_strided_slice %8 {offsets = [0, 48], sizes = [8, 8], strides = [1, 1]} : vector<8x96xbf16> to vector<8x8xbf16>
    %c0_27 = arith.constant 0 : index
    %c2_28 = arith.constant 2 : index
    %c0_29 = arith.constant 0 : index
    %c0_30 = arith.constant 0 : index
    %34 = vector.load %arg6[%c0_27, %c2_28, %c0_29, %c0_30] : memref<1x4x8x8xbf16, #tpu.memory_space<vmem>>, vector<1x1x8x8xbf16>
    %35 = vector.shape_cast %34 : vector<1x1x8x8xbf16> to vector<8x8xbf16>
    %36 = vector.shape_cast %33 : vector<8x8xbf16> to vector<1x1x8x8xbf16>
    tpu.vector_store %arg6[%c0_27, %c2_28, %c0_29, %c0_30], %36 {strides = array<i32>} : memref<1x4x8x8xbf16, #tpu.memory_space<vmem>>, vector<1x1x8x8xbf16>,
    %37 = vector.extract_strided_slice %8 {offsets = [0, 56], sizes = [8, 8], strides = [1, 1]} : vector<8x96xbf16> to vector<8x8xbf16>
    %c0_31 = arith.constant 0 : index
    %c3_32 = arith.constant 3 : index
    %c0_33 = arith.constant 0 : index
    %c0_34 = arith.constant 0 : index
    %38 = vector.load %arg6[%c0_31, %c3_32, %c0_33, %c0_34] : memref<1x4x8x8xbf16, #tpu.memory_space<vmem>>, vector<1x1x8x8xbf16>
    %39 = vector.shape_cast %38 : vector<1x1x8x8xbf16> to vector<8x8xbf16>
    %40 = vector.shape_cast %37 : vector<8x8xbf16> to vector<1x1x8x8xbf16>
    tpu.vector_store %arg6[%c0_31, %c3_32, %c0_33, %c0_34], %40 {strides = array<i32>} : memref<1x4x8x8xbf16, #tpu.memory_space<vmem>>, vector<1x1x8x8xbf16>,
    %41 = vector.extract_strided_slice %8 {offsets = [0, 64], sizes = [8, 8], strides = [1, 1]} : vector<8x96xbf16> to vector<8x8xbf16>
    %c0_35 = arith.constant 0 : index
    %c0_36 = arith.constant 0 : index
    %c0_37 = arith.constant 0 : index
    %c0_38 = arith.constant 0 : index
    %42 = vector.load %arg7[%c0_35, %c0_36, %c0_37, %c0_38] : memref<1x4x8x8xbf16, #tpu.memory_space<vmem>>, vector<1x1x8x8xbf16>
    %43 = vector.shape_cast %42 : vector<1x1x8x8xbf16> to vector<8x8xbf16>
    %44 = vector.shape_cast %41 : vector<8x8xbf16> to vector<1x1x8x8xbf16>
    tpu.vector_store %arg7[%c0_35, %c0_36, %c0_37, %c0_38], %44 {strides = array<i32>} : memref<1x4x8x8xbf16, #tpu.memory_space<vmem>>, vector<1x1x8x8xbf16>,
    %45 = vector.extract_strided_slice %8 {offsets = [0, 72], sizes = [8, 8], strides = [1, 1]} : vector<8x96xbf16> to vector<8x8xbf16>
    %c0_39 = arith.constant 0 : index
    %c1_40 = arith.constant 1 : index
    %c0_41 = arith.constant 0 : index
    %c0_42 = arith.constant 0 : index
    %46 = vector.load %arg7[%c0_39, %c1_40, %c0_41, %c0_42] : memref<1x4x8x8xbf16, #tpu.memory_space<vmem>>, vector<1x1x8x8xbf16>
    %47 = vector.shape_cast %46 : vector<1x1x8x8xbf16> to vector<8x8xbf16>
    %48 = vector.shape_cast %45 : vector<8x8xbf16> to vector<1x1x8x8xbf16>
    tpu.vector_store %arg7[%c0_39, %c1_40, %c0_41, %c0_42], %48 {strides = array<i32>} : memref<1x4x8x8xbf16, #tpu.memory_space<vmem>>, vector<1x1x8x8xbf16>,
    %49 = vector.extract_strided_slice %8 {offsets = [0, 80], sizes = [8, 8], strides = [1, 1]} : vector<8x96xbf16> to vector<8x8xbf16>
    %c0_43 = arith.constant 0 : index
    %c2_44 = arith.constant 2 : index
    %c0_45 = arith.constant 0 : index
    %c0_46 = arith.constant 0 : index
    %50 = vector.load %arg7[%c0_43, %c2_44, %c0_45, %c0_46] : memref<1x4x8x8xbf16, #tpu.memory_space<vmem>>, vector<1x1x8x8xbf16>
    %51 = vector.shape_cast %50 : vector<1x1x8x8xbf16> to vector<8x8xbf16>
    %52 = vector.shape_cast %49 : vector<8x8xbf16> to vector<1x1x8x8xbf16>
    tpu.vector_store %arg7[%c0_43, %c2_44, %c0_45, %c0_46], %52 {strides = array<i32>} : memref<1x4x8x8xbf16, #tpu.memory_space<vmem>>, vector<1x1x8x8xbf16>,
    %53 = vector.extract_strided_slice %8 {offsets = [0, 88], sizes = [8, 8], strides = [1, 1]} : vector<8x96xbf16> to vector<8x8xbf16>
    %c0_47 = arith.constant 0 : index
    %c3_48 = arith.constant 3 : index
    %c0_49 = arith.constant 0 : index
    %c0_50 = arith.constant 0 : index
    %54 = vector.load %arg7[%c0_47, %c3_48, %c0_49, %c0_50] : memref<1x4x8x8xbf16, #tpu.memory_space<vmem>>, vector<1x1x8x8xbf16>
    %55 = vector.shape_cast %54 : vector<1x1x8x8xbf16> to vector<8x8xbf16>
    %56 = vector.shape_cast %53 : vector<8x8xbf16> to vector<1x1x8x8xbf16>
    tpu.vector_store %arg7[%c0_47, %c3_48, %c0_49, %c0_50], %56 {strides = array<i32>} : memref<1x4x8x8xbf16, #tpu.memory_space<vmem>>, vector<1x1x8x8xbf16>,
    return
  }
  func.func @transform_0(%arg0: i32, %arg1: i32) -> (i32, i32, i32) {
    %c0_i32 = arith.constant 0 : i32
    %c0_i32_0 = arith.constant 0 : i32
    return %arg0, %arg1, %c0_i32 : i32, i32, i32
  }
  func.func @transform_1(%arg0: i32, %arg1: i32) -> (i32, i32) {
    %c0_i32 = arith.constant 0 : i32
    %c0_i32_0 = arith.constant 0 : i32
    %c0_i32_1 = arith.constant 0 : i32
    return %c0_i32, %c0_i32_0 : i32, i32
  }
  func.func @transform_2(%arg0: i32, %arg1: i32) -> (i32, i32) {
    %c0_i32 = arith.constant 0 : i32
    %c0_i32_0 = arith.constant 0 : i32
    %c0_i32_1 = arith.constant 0 : i32
    return %c0_i32, %c0_i32_0 : i32, i32
  }
  func.func @transform_3(%arg0: i32, %arg1: i32) -> (i32, i32, i32, i32) {
    %c0_i32 = arith.constant 0 : i32
    %c0_i32_0 = arith.constant 0 : i32
    %c0_i32_1 = arith.constant 0 : i32
    return %arg0, %c0_i32, %arg1, %c0_i32_0 : i32, i32, i32, i32
  }
  func.func @transform_4(%arg0: i32, %arg1: i32) -> (i32, i32, i32, i32) {
    %c0_i32 = arith.constant 0 : i32
    %c0_i32_0 = arith.constant 0 : i32
    %c0_i32_1 = arith.constant 0 : i32
    return %arg0, %c0_i32, %arg1, %c0_i32_0 : i32, i32, i32, i32
  }
  func.func @transform_5(%arg0: i32, %arg1: i32) -> (i32, i32, i32, i32) {
    %c0_i32 = arith.constant 0 : i32
    %c0_i32_0 = arith.constant 0 : i32
    %c0_i32_1 = arith.constant 0 : i32
    return %arg0, %c0_i32, %arg1, %c0_i32_0 : i32, i32, i32, i32
  }
}

</mosaic_0001>

<bundles_post_ra>
// kernel: m2m100_attention_forward.2
= control target key start
LH: loop header
LB: loop body
LE: loop exit
PB: predicated region body
PF: predicated region fallthrough
CT: control target
= control target key end

     0   :  { %s746_s18 = smov 0   ;;  %s748_s19 = smov 0   ;;  %s817_s0 = inlined_call_operand.vmem [shape: f32[2,8,32], index: 0, kind: input, shape index: {}]   ;;  %s818_s1 = inlined_call_operand.vmem [shape: bf16[32,96], index: 1, kind: input, shape index: {}]   ;;  %s819_s2 = inlined_call_operand.vmem [shape: f32[1,96], index: 2, kind: input, shape index: {}]   ;;  %s820_s3 = inlined_call_operand.vmem [shape: bf16[2,4,8,8], index: 3, kind: output, shape index: {0}]   ;;  %s821_s4 = inlined_call_operand.vmem [shape: bf16[2,4,8,8], index: 4, kind: output, shape index: {1}]   ;;  %s822_s5 = inlined_call_operand.vmem [shape: bf16[2,4,8,8], index: 5, kind: output, shape index: {2}]  }
   0x1   :  { %s750_s20 = smov 0  }
   0x2 LB: > { %s28_s21 = sadd.s32 1, %s697_s19  ;;  %p601_p0 = scmp.ge.s32.totalorder %s701_s20, 1  ;;  %s701_s20 = sphi %s750_s20, %s16_s20   ;;  %s697_s19 = sphi %s748_s19, %s824_s19   ;;  %s693_s18 = sphi %s746_s18, %s823_s18  }
   0x3   : > { %p30_p1 = scmp.ge.s32.totalorder %s28_s21, 2  ;;  %p214_p2 = scmp.lt.s32.totalorder %s701_s20, 3 }
   0x5   : > { %s826_s21 = smov (%p30_p1, %s28_s21), 0  ;;  %p215_p3 = pnand %p601_p0, %p214_p2 }
   0x6   : > { %v677_v0 = vld [vmem:[%s818_s1] sm:$0xff] (!%p215_p3)   ;;  %v703_v1 = vmov (!%p215_p3), 0.0   ;;  %v678_v2 = vld [vmem:[%s818_s1 + $0x8] sm:$0xff] (!%p215_p3)   ;;  %vm704_vm0 = vmmov (!%p215_p3), 0   ;;  %p263_p4 = scmp.lt.s32.totalorder (!%p215_p3), %s693_s18, 1  ;;  %vm320_vm1 = vcmask (!%p215_p3), 261120  }
   0x7   : > { %218 = sbr.rel (%p215_p3) target bundleno = 372 (0x174), region = 32  ;;  %632 = vmatprep.subr.bf16.mxu0 (!%p215_p3), %v703_v1  ;;  %636 = vmatprep.mubr.msk.bf16.mxu0 (!%p215_p3), %vm704_vm0, %v703_v1  ;;  %v609_v5 = vld [vmem:[%s819_s2] ss:$0 sm:$0xff] (!%p215_p3)  ;;  %vm365_vm2 = vcmask (!%p215_p3), 60416   ;;  %s705_s11 = smov (!%p215_p3), 104  }
   0x8   : > { %633 = vmatpush3.bf16.msra.mxu0 (!%p215_p3), %v677_v0  ;;  %s706_s12 = smov (!%p215_p3), 120   ;;  %s707_s13 = smov (!%p215_p3), 96  }
   0x9   : > { %634 = vmatprep.subr.bf16.mxu0 (!%p215_p3), %v703_v1  ;;  %s708_s14 = smov (!%p215_p3), 112   ;;  %s709_s15 = smov (!%p215_p3), 80  }
   0xa   : > { %s710_s16 = smov (!%p215_p3), 88   ;;  %s711_s17 = smov (!%p215_p3), 64  }
   0xb   : > { %s713_s22 = smov (!%p215_p3), 48   ;;  %s714_s23 = smov (!%p215_p3), 56  }
   0xc   : > { %635 = vmatpush3.bf16.msra.mxu0 (!%p215_p3), %v678_v2  ;;  %s715_s24 = smov (!%p215_p3), 40  }
   0xe   : > { %s828_s18 = smov (!%p263_p4, %s693_s18), 1 }
   0xf   : > { %s602_s26 = sshll.u32 %s828_s18, 3  ;;  %s776_s7 = sshll.u32 %s828_s18, 4 }
  0x10   : > { %s269_s29 = scalar_lea.vmem %s817_s0, %s602_s26  ;;  %s782_s10 = scalar_lea.vmem %s820_s3, %s776_s7 }
  0x11   : > { %v295_v3 = vld [vmem:[%s269_s29] sm:$0xff]  ;;  %s712_s18 = smov 72   ;;  %s285_s27 = scalar_lea.vmem %s821_s4, %s776_s7 }
  0x12   : > { %v296_v4 = vpack.c.bf16 %v295_v3, %v295_v3  ;;  %s293_s30 = scalar_lea.vmem %s822_s5, %s776_s7 }
  0x14   : > { %637 = vmatmul.mubr.msk.bf16.vlgmr.msra.gmra.mrb[0].mxu0 %vm320_vm1, %v296_v4 }
  0xe7   : > { %v358_v6 = vpop.f32.mrb[0].mxu0 }
  0xe8   : > { %v359_v7 = vadd.f32 %v609_v5, %v358_v6  ;;  %v638_v8 = vpop.f32.mrb[1].mxu0 }
  0xe9   : > { %v361_v9 = vpop.f32.mrb[2].mxu0 }
  0xea   : > { %v364_v10 = vpack.c.bf16 %v359_v7, %v359_v7  ;;  %v639_v11 = vpop.f32.mrb[3].mxu0 }
  0xec   : > { %380 = vrot.lane.b32.xlu1 %v364_v10, %s705_s11  ;;  %370 = vrot.lane.b32.xlu0 %v364_v10, %s706_s12  ;;  %366 = vst.msk [vmem:[%s782_s10] sm:$0xf] %vm365_vm2, %v364_v10 }
  0xf0   : > { %385 = vrot.lane.b32.xlu1 %v364_v10, %s707_s13  ;;  %375 = vrot.lane.b32.xlu0 %v364_v10, %s708_s14 }
  0xf4   : > { %394 = vrot.lane.b32.xlu1 %v364_v10, %s709_s15  ;;  %389 = vrot.lane.b32.xlu0 %v364_v10, %s710_s16 }
  0xf8   : > { %404 = vrot.lane.b32.xlu1 %v364_v10, %s711_s17  ;;  %399 = vrot.lane.b32.xlu0 %v364_v10, %s712_s18 }
  0xfc   : > { %413 = vrot.lane.b32.xlu1 %v364_v10, %s713_s22  ;;  %408 = vrot.lane.b32.xlu0 %v364_v10, %s714_s23 }
 0x100   : > { %418 = vrot.lane.b32.xlu0 %v364_v10, %s715_s24 }
 0x15e   : > { %v381_v12 = vpop.permute.xlu1 %380  ;;  %v371_v13 = vpop.permute.xlu0 %370 }
 0x15f   : > { %616 = vst.msk [vmem:[%s782_s10 + $0xc] sm:$0xf] %vm365_vm2, %v381_v12  ;;  %614 = vst.msk [vmem:[%s782_s10 + $0x4] sm:$0xf] %vm365_vm2, %v371_v13 }
 0x162   : > { %v386_v14 = vpop.permute.xlu1 %385  ;;  %v376_v15 = vpop.permute.xlu0 %375 }
 0x163   : > { %388 = vst.msk [vmem:[%s285_s27] sm:$0xf] %vm365_vm2, %v386_v14  ;;  %615 = vst.msk [vmem:[%s782_s10 + $0x8] sm:$0xf] %vm365_vm2, %v376_v15 }
 0x166   : > { %v395_v16 = vpop.permute.xlu1 %394  ;;  %v390_v17 = vpop.permute.xlu0 %389 }
 0x167   : > { %618 = vst.msk [vmem:[%s285_s27 + $0x8] sm:$0xf] %vm365_vm2, %v395_v16  ;;  %617 = vst.msk [vmem:[%s285_s27 + $0x4] sm:$0xf] %vm365_vm2, %v390_v17 }
 0x16a   : > { %v405_v18 = vpop.permute.xlu1 %404  ;;  %v400_v19 = vpop.permute.xlu0 %399 }
 0x16b   : > { %407 = vst.msk [vmem:[%s293_s30] sm:$0xf] %vm365_vm2, %v405_v18  ;;  %619 = vst.msk [vmem:[%s285_s27 + $0xc] sm:$0xf] %vm365_vm2, %v400_v19 }
 0x16e   : > { %v414_v20 = vpop.permute.xlu1 %413  ;;  %v409_v21 = vpop.permute.xlu0 %408 }
 0x16f   : > { %621 = vst.msk [vmem:[%s293_s30 + $0x8] sm:$0xf] %vm365_vm2, %v414_v20  ;;  %620 = vst.msk [vmem:[%s293_s30 + $0x4] sm:$0xf] %vm365_vm2, %v409_v21 }
 0x172   : > { %v419_v22 = vpop.permute.xlu0 %418 }
 0x173   : > { %622 = vst.msk [vmem:[%s293_s30 + $0xc] sm:$0xf] %vm365_vm2, %v419_v22 }
 0x174 PF: > { %s16_s20 = sadd.s32 1, %s701_s20   ;;  %s823_s18 = smov %s697_s19 }
 0x175   : > { %p13_p5 = scmp.ge.s32.totalorder %s16_s20, 4   ;;  %s824_s19 = smov %s826_s21 }
 0x177   :  { %15 = sbr.rel (!%p13_p5) target bundleno = 2 (0x2), region = 95 }

// kernel: m2m100_attention_forward.3
= control target key start
LH: loop header
LB: loop body
LE: loop exit
PB: predicated region body
PF: predicated region fallthrough
CT: control target
= control target key end

     0   :  { %10 = vsyncpa [#allocation7], 0  ;;  %s1196_s0 = inlined_call_operand.vmem [shape: bf16[2,4,8,8], index: 0, kind: input, shape index: {}]   ;;  %s1197_s1 = inlined_call_operand.vmem [shape: bf16[2,4,8,8], index: 1, kind: input, shape index: {}]   ;;  %s1198_s2 = inlined_call_operand.vmem [shape: bf16[2,4,8,8], index: 2, kind: input, shape index: {}]   ;;  %s1199_s3 = inlined_call_operand.vmem [shape: bf16[32,32], index: 3, kind: input, shape index: {}]   ;;  %s1200_s4 = inlined_call_operand.vmem [shape: f32[1,32], index: 4, kind: input, shape index: {}]   ;;  %s1201_s5 = inlined_call_operand.hbm [shape: f32[2,8,32], index: 5, kind: output, shape index: {}]  }
   0x1   :  { %12 = vsyncpa [#allocation7 + $0x1], 0  ;;  %s1022_s18 = smov 0   ;;  %s1024_s19 = smov 0  }
   0x2   :  { %s1026_s20 = smov 0   ;;  %s1028_s21 = smov 0  }
   0x3   :  { %s1030_s22 = smov 0   ;;  %s1032_s23 = smov 0  }
   0x4   :  { %s1034_s24 = smov 0   ;;  %s1036_s25 = smov 0  }
   0x5 LB: > { %s760_s26 = sadd.s32 4294967295, %s985_s25   ;;  %s761_s27 = sadd.s32 4294967294, %s985_s25   ;;  %s985_s25 = sphi %s1036_s25, %s18_s25   ;;  %s981_s24 = sphi %s1034_s24, %s1212_s24   ;;  %s977_s23 = sphi %s1032_s23, %s1211_s23   ;;  %s973_s22 = sphi %s1030_s22, %s1210_s22   ;;  %s969_s21 = sphi %s1028_s21, %s1209_s21   ;;  %s965_s20 = sphi %s1026_s20, %s1208_s20   ;;  %s961_s19 = sphi %s1024_s19, %s1207_s19   ;;  %s957_s18 = sphi %s1022_s18, %s1206_s18  }
   0x6   : > { %s36_s28 = sadd.s32 1, %s977_s23  ;;  %s44_s29 = sadd.s32 1, %s981_s24 }
   0x7   : > { %p38_p0 = scmp.ge.s32.totalorder %s36_s28, 4  ;;  %p200_p1 = scmp.ne.s32.totalorder %s965_s20, %s961_s19 }
   0x8   : > { %p201_p2 = scmp.eq.s32.totalorder %s760_s26, 7  ;;  %p206_p4 = scmp.ne.s32.totalorder %s961_s19, %s957_s18 }
   0x9   : > { %s1214_s28 = smov (%p38_p0, %s36_s28), 0  ;;  %s1216_s29 = smov (!%p38_p0, %s44_s29), %s981_s24 }
   0xa   : > { %p1071_p3 = por %p201_p2, %p200_p1  ;;  %p46_p5 = scmp.ge.s32.totalorder %s1216_s29, 2 }
   0xb   : > { %p207_p6 = scmp.eq.s32.totalorder %s761_s27, 7  ;;  %p764_p7 = scmp.ge.s32.totalorder %s985_s25, 1 }
   0xc   : > { %p277_p8 = scmp.lt.s32.totalorder %s985_s25, 9  ;;  %s1218_s29 = smov (%p46_p5, %s1216_s29), 0 }
   0xd   : > { %p1081_p9 = por %p207_p6, %p206_p4  ;;  %s185_s7 = ssub.s32 %s981_s24, %s1218_s29 }
   0xe   : > { %p278_p10 = pnand %p764_p7, %p277_p8  ;;  %s190_s8 = sadd.s32 1, %s965_s20 }
   0xf   : > { %p188_p11 = scmp.eq.s32.totalorder %s185_s7, 0  ;;  %s1202_s10 = sand.u32 (!%p278_p10), 1, %s961_s19   ;;  %vm382_vm0 = vcmask (!%p278_p10), 64512   ;;  %v987_v0 = vmov (!%p278_p10), 0.0   ;;  %vm988_vm1 = vmmov (!%p278_p10), 0   ;;  %vm379_vm2 = vcmask (!%p278_p10), 7168  }
  0x10   : > { %281 = sbr.rel (%p278_p10) target bundleno = 1092 (0x444), region = 40  ;;  %p337_p12 = scmp.lt.s32.totalorder (!%p278_p10), %s973_s22, 1  ;;  %790 = vmatprep.subr.bf16.mxu0 (!%p278_p10), %v987_v0  ;;  %383 = vst.msk [vmem:[#allocation4] sm:$0xff] (!%p278_p10), %vm382_vm0, %v987_v0  ;;  %792 = vmatprep.mubr.msk.bf16.mxu0 (!%p278_p10), %vm988_vm1, %v987_v0  ;;  %v989_v4 = vmov (!%p278_p10), -inf   ;;  %v990_v10 = vmov (!%p278_p10), 0   ;;  %vm469_vm3 = vcmask (!%p278_p10), 1043456  }
  0x11   : > { %s1089_s9 = scalar_select %p188_p11, %s965_s20, %s190_s8  }
  0x12   : > { %s1095_s11 = sshll.u32 (!%p278_p10), %s1202_s10, 3  ;;  %p339_p13 = scmp.lt.s32.totalorder (!%p278_p10), %s969_s21, 3  ;;  %796 = vmatprep.subr.bf16.mxu1 (!%p278_p10), %v987_v0  ;;  %798 = vmatprep.mubr.msk.bf16.mxu1 (!%p278_p10), %vm988_vm1, %v987_v0  ;;  %380 = vst.msk [vmem:[#allocation2] sm:$0xff] (!%p278_p10), %vm379_vm2, %v989_v4  ;;  %381 = vst.msk [vmem:[#allocation3] sm:$0xff] (!%p278_p10), %vm379_vm2, %v987_v0 }
  0x13   : > { %883 = vset.pattern.permute.xlu0 (!%p278_p10), %v990_v10  ;;  %884 = vset.pattern.permute.xlu1 (!%p278_p10), %v990_v10  ;;  %p776_p0 = scmp.ne.s32.totalorder (!%p278_p10), %s969_s21, 0 }
  0x17   : > { %s338_s12 = scalar_select %p337_p12, %s973_s22, 1  ;;  %v458_v33 = vld [vmem:[#allocation4] sm:$0xff] }
  0x18   : > { %s1103_s13 = scalar_select %p339_p13, %s969_s21, 3 }
  0x19   : > { %s766_s14 = sshll.u32 %s338_s12, 2  ;;  %v434_v11 = vld [vmem:[#allocation2] sm:$0xff]  ;;  %v450_v27 = vld [vmem:[#allocation3] sm:$0xff]  ;;  %vm580_vm4 = vcmask (!%p776_p0), 261120  }
  0x1a   : > { %s345_s15 = sadd.s32 %s766_s14, %s1103_s13 }
  0x1b   : > { %s1106_s16 = sshll.u32 %s345_s15, 2  ;;  %s772_s15 = sshll.u32 %s1103_s13, 2 }
  0x1c   : > { %s358_s27 = scalar_lea.vmem %s1197_s1, %s1106_s16  ;;  %s347_s10 = scalar_lea.vmem %s1196_s0, %s1106_s16 }
  0x1d   : > { %v385_v1 = vld [vmem:[%s358_s27] sm:$0xf]  ;;  %s369_s14 = scalar_lea.vmem %s1198_s2, %s1106_s16  ;;  %s373_s27 = scalar_lea.vmem %s1199_s3, %s772_s15 }
  0x1e   : > { %v392_v2 = vsel %vm382_vm0, %v385_v1, 0  ;;  %v384_v3 = vld [vmem:[%s347_s10] sm:$0xf]  ;;  %s336_s13 = scalar_lea.vmem [#allocation6], %s1095_s11 }
  0x1f   : > { %791 = vmatpush3.bf16.xpose.msra.mxu0 %v392_v2  ;;  %v386_v15 = vld [vmem:[%s369_s14] sm:$0xf] }
  0x20   : > { %v471_v16 = vsel %vm469_vm3, %v386_v15, 0  ;;  %v529_v20 = vld [vmem:[%s373_s27] sm:$0xf] }
  0x21   : > { %797 = vmatpush3.bf16.msra.mxu1 %v471_v16  ;;  %v534_v22 = vsel %vm469_vm3, %v529_v20, 0 }
  0x22   : > { %802 = vmatprep.subr.bf16.mxu1 %v987_v0 }
  0x26   : > { %793 = vmatmul.mubr.msk.bf16.vlgmr.msra.gmra.mrb[0].mxu0 %vm382_vm0, %v384_v3 }
  0xf9   : > { %v428_v5 = vpop.f32.mrb[0].mxu0 }
  0xfa   : > { %v794_v6 = vpop.f32.mrb[1].mxu0  ;;  %v435_v7 = vsel %vm382_vm0, %v428_v5, -inf }
  0xfb   : > { %436 = vmax.xlane.f32.xlu0 %v435_v7  ;;  %v431_v8 = vpop.f32.mrb[2].mxu0 }
  0xfc   : > { %v795_v9 = vpop.f32.mrb[3].mxu0 }
 0x188   : > { %v437_v12 = vpop.xlane.xlu0 %436 }
 0x189   : > { %v438_v13 = vmax.f32 %v434_v11, %v437_v12 }
 0x18b   : > { %v439_v14 = vsub.f32 %v434_v11, %v438_v13  ;;  %515 = vst.msk [vmem:[#allocation2] sm:$0xff] %vm379_vm2, %v438_v13  ;;  %444 = vperm.xlu0 %883, %v438_v13  }
 0x18d   : > { %v440_v25 = vmul.f32 1.442695, %v439_v14 }
 0x20a   : > { %v445_v17 = vpop.permute.xlu0 %444 }
 0x20b   : > { %v447_v18 = vsub.f32 %v428_v5, %v445_v17 }
 0x20d   : > { %v448_v19 = vmul.f32 1.442695, %v447_v18 }
 0x20f   : > { %885 = vpow2.f32 %v448_v19 }
 0x210   : > { %887 = vpow2.f32 %v440_v25 }
 0x219   : > { %v886_v21 = vpop.eup %885 }
 0x21a   : > { %v452_v23 = vsel %vm382_vm0, %v886_v21, 0.0  ;;  %v465_v24 = vpack.c.bf16 %v886_v21, %v886_v21  ;;  %v888_v26 = vpop.eup %887 }
 0x21b   : > { %453 = vadd.xlane.f32.xlu1 %v452_v23  ;;  %v451_v28 = vmul.f32 %v888_v26, %v450_v27 }
 0x21c   : > { %799 = vmatmul.mubr.msk.bf16.vlgmr.msra.gmra.mrb[0].mxu1 %vm382_vm0, %v465_v24 }
 0x21d   : > { %803 = vmatpush3.bf16.msra.mxu1 %v534_v22  ;;  %804 = vmatprep.mubr.msk.bf16.mxu1 %vm988_vm1, %v987_v0 }
 0x22c   : > { %461 = vperm.xlu1 %884, %v888_v26  }
 0x2a8   : > { %v454_v29 = vpop.xlane.xlu1 %453 }
 0x2a9   : > { %v455_v30 = vadd.f32 %v454_v29, %v451_v28 }
 0x2ab   : > { %457 = vst.msk [vmem:[#allocation3] sm:$0xff] %vm379_vm2, %v455_v30 }
 0x2ac   : > { %v462_v34 = vpop.permute.xlu1 %461 }
 0x2ad   : > { %v464_v35 = vmul.f32 %v462_v34, %v458_v33 }
 0x2b2   : > { %v519_v31 = vld [vmem:[#allocation3] sm:$0xff] }
 0x2b3   : > { %889 = vrcp.f32 %v519_v31 }
 0x2bd   : > { %v890_v32 = vpop.eup %889 }
 0x2be   : > { %524 = vperm.xlu1 %884, %v890_v32  }
 0x2ef   : > { %v507_v36 = vpop.f32.mrb[0].mxu1 }
 0x2f0   : > { %v513_v37 = vadd.f32 %v507_v36, %v464_v35  ;;  %v800_v38 = vpop.f32.mrb[1].mxu1 }
 0x2f1   : > { %v510_v39 = vpop.f32.mrb[2].mxu1 }
 0x2f2   : > { %514 = vst.msk [vmem:[#allocation4] sm:$0xff] %vm382_vm0, %v513_v37  ;;  %v801_v40 = vpop.f32.mrb[3].mxu1 }
 0x2f9   : > { %v521_v41 = vld [vmem:[#allocation4] sm:$0xff] }
 0x33d   : > { %v525_v42 = vpop.permute.xlu1 %524 }
 0x33e   : > { %v527_v43 = vmul.f32 %v525_v42, %v521_v41 }
 0x340   : > { %v528_v44 = vpack.c.bf16 %v527_v43, %v527_v43 }
 0x342   : > { %805 = vmatmul.mubr.msk.bf16.vlgmr.msra.gmra.mrb[4].mxu1 %vm382_vm0, %v528_v44 }
 0x412   : > { %579 = sbr.rel (%p776_p0) target bundleno = 1049 (0x419), region = 52 }
 0x415   : > { %v570_v45 = vpop.f32.mrb[4].mxu1 }
 0x416   : > { %v806_v46 = vpop.f32.mrb[5].mxu1  ;;  %581 = vst.msk [vmem:[#allocation5] sm:$0xff] (!%p776_p0), %vm580_vm4, %v570_v45 }
 0x417   : > { %v573_v47 = vpop.f32.mrb[6].mxu1 }
 0x418   : > { %v807_v48 = vpop.f32.mrb[7].mxu1 }
 0x419 PF: > { %p777_p1 = scmp.le.s32.totalorder %s969_s21, 0 }
 0x41a   : > { %vm588_vm5 = vcmask (!%p777_p1), 261120  }
 0x41b   : > { %585 = sbr.rel (%p777_p1) target bundleno = 1058 (0x422), region = 56 }
 0x41d   : > { %v586_v49 = vld [vmem:[#allocation5] sm:$0xff] (!%p777_p1) }
 0x41e   : > { %v587_v50 = vadd.f32 (!%p777_p1), %v586_v49, %v570_v45 }
 0x420   : > { %589 = vst.msk [vmem:[#allocation5] sm:$0xff] (!%p777_p1), %vm588_vm5, %v587_v50 }
 0x422 PF: > { %p778_p2 = scmp.ne.s32.totalorder %s969_s21, 3 }
 0x423   : > { %v779_v52 = vld [vmem:[%s1200_s4] ss:$0 sm:$0xff] (!%p778_p2)  ;;  %vm603_vm6 = vcmask (!%p778_p2), 261120  }
 0x424   : > { %593 = sbr.rel (%p778_p2) target bundleno = 1067 (0x42b), region = 60 }
 0x427   : > { %v594_v51 = vld [vmem:[#allocation5] sm:$0xff] (!%p778_p2) }
 0x428   : > { %v602_v53 = vadd.f32 (!%p778_p2), %v779_v52, %v594_v51 }
 0x42a   : > { %604 = vst.msk [vmem:[%s336_s13] sm:$0xff] (!%p778_p2), %vm603_vm6, %v602_v53 }
 0x42b PF: > { %s781_s7 = sshll.u32 %s973_s22, 7  ;;  %s620_s21 = sshll.u32 %s336_s13, 4  ;;  %s621_s21 = int_to_ptr.vmem [resolvable:$true] %s620_s21 }
 0x42c   : > { %s1147_s12 = scalar_lea.hbm %s1201_s5, %s781_s7  ;;  %s1205_s14 = sand.u32 1, %s961_s19  }
 0x42d   : > { %s606_s15 = scalar_lea.sflag [#allocation7], %s1205_s14  ;;  %s891_s17 = scalar_lea.vmem %s621_s21, 128 }
 0x42e   : > { %p892_p4 = scmp.ne.s32.totalorder %s621_s21, %s891_s17  ;;  %s991_s26 = smov [#allocation6]  }
 0x42f   : > { %s895_s27 = sshll.u32 %s991_s26, 4  ;;  %s896_s27 = int_to_ptr.vmem [resolvable:$false] %s895_s27 }
 0x430   : > { %p893_p5 = pnand %p892_p4, %p1071_p3  ;;  %s897_s16 = scalar_lea.vmem %s896_s27, 256 }
 0x431   : > { %p898_p7 = scmp.lt.s32.totalorder %s621_s21, %s896_s27  ;;  %p899_p8 = scmp.lt.s32.totalorder %s897_s16, %s891_s17 }
 0x432   : > { %p894_p6 = pneg %p893_p5 }
 0x433   : > { %p900_p10 = por %p899_p8, %p898_p7 }
 0x435   : > { %p901_p11 = pnand %p900_p10, %p894_p6 }
 0x437   : > { %904 = shalt.err (!%p901_p11)
}
 0x438   : > { %s905_s22 = scalar_lea.hbm %s1147_s12, 128  ;;  %s909_s7 = scalar_lea.hbm %s1201_s5, 256 }
 0x439   : > { %p906_p12 = scmp.ne.s32.totalorder %s1147_s12, %s905_s22  ;;  %p910_p1 = scmp.lt.u32.totalorder %s1147_s12, %s1201_s5 }
 0x43a   : > { %p911_p2 = scmp.lt.u32.totalorder %s909_s7, %s905_s22  ;;  %p913_p5 = scmp.lt.u32.totalorder %s905_s22, %s1147_s12 }
 0x43b   : > { %p907_p13 = pnand %p906_p12, %p1071_p3 }
 0x43c   : > { %p912_p4 = por %p911_p2, %p910_p1 }
 0x43d   : > { %p908_p0 = pneg %p907_p13 }
 0x43e   : > { %p914_p6 = por %p913_p5, %p912_p4 }
 0x440   : > { %p915_p7 = pnand %p914_p6, %p908_p0 }
 0x442   : > { %918 = shalt.err (!%p915_p7)
}
 0x443   : > { %808 = dma.vmem_to_hbm [thread:$0]  (%p1071_p3), %s621_s21, 128, %s1147_s12, %s606_s15  }
 0x444 PF: > { %p814_p8 = scmp.ge.s32.totalorder %s985_s25, 2  ;;  %s632_s14 = sand.u32 1, %s957_s18  }
 0x445   : > { %s633_s17 = scalar_lea.sflag [#allocation7], %s632_s14 }
 0x446   : > { %p811_p10 = pnand %p814_p8, %p1081_p9 }
 0x448   : > { %952 = dma.done.wait (!%p811_p10), %s633_s17, 128  }
 0x449   : > { %954 = vsyncadd (!%p811_p10), %s633_s17, 4294967168  ;;  %s18_s25 = sadd.s32 1, %s985_s25   ;;  %s1206_s18 = smov %s961_s19 }
 0x44a   : > { %p15_p11 = scmp.ge.s32.totalorder %s18_s25, 10   ;;  %s1207_s19 = smov %s965_s20 }
 0x44b   : > { %s1208_s20 = smov %s1089_s9  ;;  %s1209_s21 = smov %s977_s23 }
 0x44c   : > { %s1210_s22 = smov %s981_s24  ;;  %s1211_s23 = smov %s1214_s28 }
 0x44d   : > { %s1212_s24 = smov %s1218_s29  ;;  %17 = sbr.rel (!%p15_p11) target bundleno = 5 (0x5), region = 104 }
 0x454   :  { %638 = vsyncpa [#allocation7], 1 }
 0x455   :  { %640 = vsyncpa [#allocation7 + $0x1], 1 }

</bundles_post_ra>
